<compile_context>
chip_gen: v7x
topology: tpu7x:2x2x1
jax: 0.10.0
libtpu: 0.0.40
codegen_flags: <defaults>
</compile_context>

<pallas_src>
import functools

import jax
import jax.numpy as jnp
from jax.experimental import pallas as pl
from jax.experimental.pallas import tpu as pltpu

CLAMP_MIN = -0.5
CLAMP_MAX = 0.5


def _clamp_kernel(x_ref, o_ref, *, min_val, max_val):
    # jnp.clip lowers to two VPU ops (vmax, vmin) on the whole tile.
    o_ref[...] = jnp.clip(x_ref[...], min_val, max_val)


def _lane_dense_2d(total, last_dim):
    """Pick (rows, cols) with cols a multiple of 128 (lane dense), rows >= 8 if possible."""
    for c in (1024, 512, 256, 128):
        if total % c == 0 and total // c >= 8:
            return total // c, c
    for c in (1024, 512, 256, 128):
        if total % c == 0:
            return total // c, c
    # Fallback: keep original last dim. Still correct (whole-array block is
    # exempt from the (8,128) divisibility rule); just not lane-dense.
    return total // last_dim, last_dim


def clamp_pallas(x, min_val=CLAMP_MIN, max_val=CLAMP_MAX):
    orig_shape = x.shape
    total = x.size
    R, C = _lane_dense_2d(total, orig_shape[-1] if x.ndim else 1)
    x2d = x.reshape(R, C)

    kernel = functools.partial(
        _clamp_kernel, min_val=float(min_val), max_val=float(max_val))

    itemsize = x2d.dtype.itemsize
    # ~4 MiB per input tile -> (in + out) * double-buffer ~= 16 MiB, well under
    # v7x's 32 MiB scoped-VMEM default (and trivially under v5e/v6e limits).
    tile_budget_bytes = 4 * 1024 * 1024
    max_rows = max(8, (tile_budget_bytes // max(C * itemsize, 1)) // 8 * 8)

    if R <= max_rows:
        # Tiny case (e.g. 2x4x16x16): single whole-array VMEM block, no grid
        # bookkeeping, no index maps — pure launch + one DMA each way.
        out = pl.pallas_call(
            kernel,
            out_shape=jax.ShapeDtypeStruct((R, C), x2d.dtype),
        )(x2d)
    else:
        # Production-sized tensors: row-tile so DMA overlaps compute.
        br = max_rows
        out = pl.pallas_call(
            kernel,
            out_shape=jax.ShapeDtypeStruct((R, C), x2d.dtype),
            grid=(pl.cdiv(R, br),),
            in_specs=[pl.BlockSpec((br, C), lambda i: (i, 0))],
            out_specs=pl.BlockSpec((br, C), lambda i: (i, 0)),
            compiler_params=pltpu.CompilerParams(
                dimension_semantics=("parallel",)),  # megacore sharding on v7x
        )(x2d)
        # TODO(synk): if the caller can donate x, add input_output_aliases={0: 0}
        # to clamp in place and halve HBM traffic/footprint.

    return out.reshape(orig_shape)


if __name__ == "__main__":
    key = jax.random.PRNGKey(0)
    x = jax.random.normal(key, (2, 4, 16, 16), dtype=jnp.float32)

    y = clamp_pallas(x, CLAMP_MIN, CLAMP_MAX)
    y = jax.block_until_ready(y)

    # Reference check against plain JAX clamp.
    y_ref = jnp.clip(x, CLAMP_MIN, CLAMP_MAX)
    assert y.shape == x.shape and y.dtype == x.dtype
    assert jnp.allclose(y, y_ref), "mismatch vs reference clamp"

    print("KERNEL_OK")
</pallas_src>

<mosaic_0001>
module attributes {stable_mosaic.version = 11 : i64} {
  func.func @_clamp_kernel(%arg0: memref<8x256xf32, #tpu.memory_space<vmem>>, %arg1: memref<8x256xf32, #tpu.memory_space<vmem>>) attributes {dimension_semantics = [], scalar_prefetch = 0 : i64, scratch_operands = 0 : i64, tpu.core_type = #tpu.core_type<tc>} {
    %c0 = arith.constant 0 : index
    %c0_0 = arith.constant 0 : index
    %0 = vector.load %arg0[%c0, %c0_0] : memref<8x256xf32, #tpu.memory_space<vmem>>, vector<8x256xf32>
    %cst = arith.constant -5.000000e-01 : f32
    %cst_1 = arith.constant 5.000000e-01 : f32
    %1 = vector.broadcast %cst : f32 to vector<8x256xf32>
    %2 = arith.maximumf %1, %0 : vector<8x256xf32>
    %3 = vector.broadcast %cst_1 : f32 to vector<8x256xf32>
    %4 = arith.minimumf %3, %2 : vector<8x256xf32>
    %c0_2 = arith.constant 0 : index
    %c0_3 = arith.constant 0 : index
    %5 = vector.load %arg1[%c0_2, %c0_3] : memref<8x256xf32, #tpu.memory_space<vmem>>, vector<8x256xf32>
    tpu.vector_store %arg1[%c0_2, %c0_3], %4 {strides = array<i32>} : memref<8x256xf32, #tpu.memory_space<vmem>>, vector<8x256xf32>,
    return
  }
}

</mosaic_0001>

<bundles_post_ra>
// kernel: tpu_custom_call.1
= control target key start
LH: loop header
LB: loop body
LE: loop exit
PB: predicated region body
PF: predicated region fallthrough
CT: control target
= control target key end

     0   :  { %6 = vsyncpa [#allocation3], 0  ;;  %s132_s0 = inlined_call_operand.hbm [shape: f32[8,256], index: 0, kind: input, shape index: {}]   ;;  %s133_s1 = inlined_call_operand.hbm [shape: f32[8,256], index: 1, kind: output, shape index: {}]  }
   0x1   :  { %7 = vsyncpa [#allocation4], 0  ;;  %s96_s6 = smov [#allocation2]   ;;  %s48_s10 = scalar_lea.hbm %s132_s0, 256 }
   0x2   :  { %s14_s7 = sshll.u32 %s96_s6, 4  ;;  %p49_p0 = scmp.ne.s32.totalorder %s132_s0, %s48_s10  ;;  %s15_s7 = int_to_ptr.vmem [resolvable:$true] %s14_s7 }
   0x3   :  { %p52_p1 = scmp.lt.u32.totalorder %s48_s10, %s132_s0 }
   0x5   :  { %p54_p2 = pnand %p52_p1, %p49_p0 }
   0x7   :  { %57 = shalt.err (!%p54_p2)
}
   0x8   :  { %s58_s15 = scalar_lea.vmem %s15_s7, 256  ;;  %p63_p4 = scmp.lt.s32.totalorder %s15_s7, %s15_s7 }
   0x9   :  { %p59_p3 = scmp.ne.s32.totalorder %s15_s7, %s58_s15  ;;  %p64_p5 = scmp.lt.s32.totalorder %s58_s15, %s58_s15 }
   0xb   :  { %p65_p6 = por %p64_p5, %p63_p4 }
   0xd   :  { %p66_p7 = pnand %p65_p6, %p59_p3 }
   0xf   :  { %69 = shalt.err (!%p66_p7)
}
  0x10   :  { %17 = dma.hbm_to_vmem [thread:$0]  %s132_s0, 256, %s15_s7, [#allocation3]  }
  0x11   :  { %92 = dma.done.wait [#allocation3], 256  }
  0x12   :  { %93 = vsyncadd [#allocation3], 4294967040  ;;  %s97_s18 = smov [#allocation5]   ;;  %v21_v0 = vld [vmem:[#allocation2] sm:$0xff]  ;;  %v22_v1 = vld [vmem:[#allocation2 + $0x8] sm:$0xff] }
  0x13   :  { %s35_s19 = sshll.u32 %s97_s18, 4  ;;  %v44_v2 = vclamps-f32 %v21_v0, 0.5  ;;  %v45_v3 = vclamps-f32 %v22_v1, 0.5  ;;  %s36_s19 = int_to_ptr.vmem [resolvable:$true] %s35_s19 }
  0x14   :  { %s70_s20 = scalar_lea.vmem %s36_s19, 256  ;;  %p75_p9 = scmp.lt.s32.totalorder %s36_s19, %s36_s19 }
  0x15   :  { %27 = vst [vmem:[#allocation5] sm:$0xff] %v44_v2  ;;  %28 = vst [vmem:[#allocation5 + $0x8] sm:$0xff] %v45_v3  ;;  %p71_p8 = scmp.ne.s32.totalorder %s36_s19, %s70_s20  ;;  %p76_p10 = scmp.lt.s32.totalorder %s70_s20, %s70_s20 }
  0x17   :  { %p77_p11 = por %p76_p10, %p75_p9 }
  0x19   :  { %p78_p12 = pnand %p77_p11, %p71_p8 }
  0x1b   :  { %81 = shalt.err (!%p78_p12)
}
  0x1c   :  { %s82_s22 = scalar_lea.hbm %s133_s1, 256 }
  0x1d   :  { %p83_p13 = scmp.ne.s32.totalorder %s133_s1, %s82_s22  ;;  %p86_p0 = scmp.lt.u32.totalorder %s82_s22, %s133_s1 }
  0x1f   :  { %p88_p1 = pnand %p86_p0, %p83_p13 }
  0x21   :  { %91 = shalt.err (!%p88_p1)
}
  0x22   :  { %38 = dma.vmem_to_hbm [thread:$0]  %s36_s19, 256, %s133_s1, [#allocation4]  }
  0x23   :  { %94 = dma.done.wait [#allocation4], 256  }
  0x24   :  { %95 = vsyncadd [#allocation4], 4294967040 }
  0x25   :  { %42 = vsyncpa [#allocation3], 1 }
  0x26   :  { %43 = vsyncpa [#allocation4], 1 }

</bundles_post_ra>
